<compile_context>
chip_gen: v7x
topology: tpu7x:2x2x1
jax: 0.10.0
libtpu: 0.0.40
codegen_flags: <defaults>
</compile_context>

<pallas_src>
import jax
import jax.numpy as jnp
from jax.experimental import pallas as pl
from jax.experimental.pallas import tpu as pltpu


def _round_up(a, b):
    return ((a + b - 1) // b) * b


def _mwce_kernel(w_ref, x_ref, t_ref, m_ref, loss_ref, msum_ref):
    """One grid step = one (C, TP) tile of pixels for one batch element.

    w_ref   : (C, 1)     f32  class weights (resident, same tile every step)
    x_ref   : (1, C, TP) any  logits tile
    t_ref   : (1, 1, TP) i32  target class per pixel
    m_ref   : (1, 1, TP) f32  mask per pixel
    loss_ref: (1, 1, TP) f32  per-batch lane-dense accumulator of masked loss
    msum_ref: (1, 1, TP) f32  per-batch lane-dense accumulator of the mask
    """
    p = pl.program_id(1)

    @pl.when(p == 0)
    def _():
        loss_ref[...] = jnp.zeros_like(loss_ref)
        msum_ref[...] = jnp.zeros_like(msum_ref)

    x = x_ref[0].astype(jnp.float32)                        # (C, TP)

    # --- softmax over classes (axis 0), i.e. torch.softmax(inputs, dim=1) ---
    mx = jnp.max(x, axis=0, keepdims=True)
    ex = jnp.exp(x - mx)
    probs = ex / jnp.sum(ex, axis=0, keepdims=True)         # (C, TP), in [0,1]

    # --- log_softmax of the probabilities (inside F.cross_entropy) ---
    # probs in [0, 1] -> exp() is already safe, no max-stabilization needed.
    lse = jnp.log(jnp.sum(jnp.exp(probs), axis=0, keepdims=True))
    logp = probs - lse                                      # (C, TP)

    # --- pick target class + per-class weight without a float one-hot ---
    tgt = t_ref[0]                                          # (1, TP) int32
    eq = jax.lax.broadcasted_iota(jnp.int32, x.shape, 0) == tgt
    w = w_ref[...]                                          # (C, 1)
    per_pixel = -jnp.sum(jnp.where(eq, w * logp, 0.0),
                         axis=0, keepdims=True)             # (1, TP)

    msk = m_ref[0]                                          # (1, TP) f32
    loss_ref[0] = loss_ref[0] + per_pixel * msk
    msum_ref[0] = msum_ref[0] + msk


def masked_weighted_cross_entropy_loss(logits_nchw, target, mask, class_weights,
                                       tile_pixels=2048):
    """logits_nchw: (N, C, H, W); target: (N, H, W) int; mask: (N, H, W)."""
    N, C, H, W = logits_nchw.shape
    HW = H * W

    # Lane-aligned tile size; pad the pixel axis (padded pixels get mask==0,
    # so they contribute nothing to either running sum).
    tp = min(_round_up(tile_pixels, 128), _round_up(HW, 128))
    HWp = _round_up(HW, tp)
    pad = HWp - HW

    # Free, contiguous views -- no HBM transpose, no wrapper-side dtype cast
    # of the (large) logits tensor.
    x = logits_nchw.reshape(N, C, HW)
    t = target.reshape(N, 1, HW).astype(jnp.int32)
    m = mask.reshape(N, 1, HW).astype(jnp.float32)
    if pad:
        x = jnp.pad(x, ((0, 0), (0, 0), (0, pad)))
        t = jnp.pad(t, ((0, 0), (0, 0), (0, pad)))
        m = jnp.pad(m, ((0, 0), (0, 0), (0, pad)))
    w = class_weights.reshape(C, 1).astype(jnp.float32)

    grid = (N, HWp // tp)

    # VMEM budget: double-buffered inputs + resident outputs, with headroom,
    # kept well inside v7x's smaller (64 MiB physical / 32 MiB scoped) VMEM.
    xbytes = jnp.dtype(x.dtype).itemsize
    step_bytes = C * tp * xbytes + 2 * tp * 4 + 2 * tp * 4 + C * 4
    vmem_limit = int(min(40 << 20, max(16 << 20, 4 * step_bytes)))

    part_loss, part_mask = pl.pallas_call(
        _mwce_kernel,
        out_shape=(jax.ShapeDtypeStruct((N, 1, tp), jnp.float32),
                   jax.ShapeDtypeStruct((N, 1, tp), jnp.float32)),
        grid_spec=pltpu.PrefetchScalarGridSpec(
            num_scalar_prefetch=0,
            grid=grid,
            in_specs=[
                pl.BlockSpec((C, 1), lambda n, p: (0, 0)),         # class weights
                pl.BlockSpec((1, C, tp), lambda n, p: (n, 0, p)),  # logits tile
                pl.BlockSpec((1, 1, tp), lambda n, p: (n, 0, p)),  # target tile
                pl.BlockSpec((1, 1, tp), lambda n, p: (n, 0, p)),  # mask tile
            ],
            out_specs=[
                pl.BlockSpec((1, 1, tp), lambda n, p: (n, 0, 0)),  # loss accum
                pl.BlockSpec((1, 1, tp), lambda n, p: (n, 0, 0)),  # mask accum
            ],
        ),
        compiler_params=pltpu.CompilerParams(
            # batch axis parallel (both TCs on v7x); pixel axis is a reduction.
            dimension_semantics=("parallel", "arbitrary"),
            vmem_limit_bytes=vmem_limit,
        ),
    )(w, x, t, m)

    # TODO(synk): when N == 1, split the pixel range into >=2 parallel chunks
    # (instead of the batch axis) to engage both v7x TensorCores.

    loss_sum = jnp.sum(part_loss)
    cnt = jnp.sum(part_mask)
    return jnp.where(cnt != 0.0, loss_sum / cnt, jnp.float32(0.0))


def _reference(logits, target, mask, weights):
    """Pure-JAX reference mirroring the PyTorch module."""
    probs = jax.nn.softmax(logits, axis=1)
    logp = jax.nn.log_softmax(probs, axis=1)
    picked = jnp.take_along_axis(logp, target[:, None, :, :], axis=1)[:, 0]
    w_t = weights[target]
    loss = -w_t * picked
    cnt = mask.sum()
    return jnp.where(cnt != 0, (loss * mask).sum() / cnt, 0.0)


if __name__ == "__main__":
    key = jax.random.PRNGKey(0)
    k1, k2, k3 = jax.random.split(key, 3)

    N, C, H, W = 2, 4, 16, 16
    logits = jax.random.normal(k1, (N, C, H, W), dtype=jnp.float32)
    target = jax.random.randint(k2, (N, H, W), 0, C, dtype=jnp.int32)
    mask = (jax.random.uniform(k3, (N, H, W)) > 0.3).astype(jnp.float32)

    # deterministic per-class weights (module __init__ takes them as an arg)
    class_weights = jnp.array([1.0, 2.0, 0.5, 1.5], dtype=jnp.float32)

    out = masked_weighted_cross_entropy_loss(logits, target, mask, class_weights)
    out = jax.block_until_ready(out)

    ref = jax.block_until_ready(_reference(logits, target, mask, class_weights))
    assert jnp.allclose(out, ref, atol=1e-5, rtol=1e-5), (out, ref)

    print("KERNEL_OK")
</pallas_src>

<mosaic_0001>
module attributes {stable_mosaic.version = 11 : i64} {
  func.func @_mwce_kernel(%arg0: i32, %arg1: i32, %arg2: memref<4x1xf32, #tpu.memory_space<vmem>>, %arg3: memref<1x4x256xf32, #tpu.memory_space<vmem>>, %arg4: memref<1x1x256xi32, #tpu.memory_space<vmem>>, %arg5: memref<1x1x256xf32, #tpu.memory_space<vmem>>, %arg6: memref<1x1x256xf32, #tpu.memory_space<vmem>>, %arg7: memref<1x1x256xf32, #tpu.memory_space<vmem>>) attributes {dimension_semantics = [#tpu.dimension_semantics<parallel>, #tpu.dimension_semantics<arbitrary>], iteration_bounds = array<i64: 2, 1>, scalar_prefetch = 0 : i64, scratch_operands = 0 : i64, tpu.core_type = #tpu.core_type<tc>, window_params = [{pipeline_mode = #tpu.pipeline_mode<synchronous>, transform_indices = @transform_0, window_bounds = array<i64: 4, 1>}, {transform_indices = @transform_1, window_bounds = array<i64: 1, 4, 256>}, {transform_indices = @transform_2, window_bounds = array<i64: 1, 1, 256>}, {transform_indices = @transform_3, window_bounds = array<i64: 1, 1, 256>}, {transform_indices = @transform_4, window_bounds = array<i64: 1, 1, 256>}, {transform_indices = @transform_5, window_bounds = array<i64: 1, 1, 256>}]} {
    %c0_i32 = arith.constant 0 : i32
    %0 = arith.cmpi eq, %arg1, %c0_i32 : i32
    %1 = arith.extui %0 : i1 to i32
    %c0_i32_0 = arith.constant 0 : i32
    %2 = arith.cmpi ne, %1, %c0_i32_0 : i32
    scf.if %2 {
      %cst_28 = arith.constant 0.000000e+00 : f32
      %49 = vector.broadcast %cst_28 : f32 to vector<1x1x256xf32>
      %c0_29 = arith.constant 0 : index
      %c0_30 = arith.constant 0 : index
      %c0_31 = arith.constant 0 : index
      %50 = vector.load %arg6[%c0_29, %c0_30, %c0_31] : memref<1x1x256xf32, #tpu.memory_space<vmem>>, vector<1x1x256xf32>
      tpu.vector_store %arg6[%c0_29, %c0_30, %c0_31], %49 {strides = array<i32>} : memref<1x1x256xf32, #tpu.memory_space<vmem>>, vector<1x1x256xf32>,
      %cst_32 = arith.constant 0.000000e+00 : f32
      %51 = vector.broadcast %cst_32 : f32 to vector<1x1x256xf32>
      %c0_33 = arith.constant 0 : index
      %c0_34 = arith.constant 0 : index
      %c0_35 = arith.constant 0 : index
      %52 = vector.load %arg7[%c0_33, %c0_34, %c0_35] : memref<1x1x256xf32, #tpu.memory_space<vmem>>, vector<1x1x256xf32>
      tpu.vector_store %arg7[%c0_33, %c0_34, %c0_35], %51 {strides = array<i32>} : memref<1x1x256xf32, #tpu.memory_space<vmem>>, vector<1x1x256xf32>,
    } else {
    }
    %c0 = arith.constant 0 : index
    %c0_1 = arith.constant 0 : index
    %c0_2 = arith.constant 0 : index
    %3 = vector.load %arg3[%c0, %c0_1, %c0_2] : memref<1x4x256xf32, #tpu.memory_space<vmem>>, vector<1x4x256xf32>
    %4 = vector.shape_cast %3 : vector<1x4x256xf32> to vector<4x256xf32>
    %cst = arith.constant dense<0xFF800000> : vector<256xf32>
    %5 = vector.multi_reduction <maximumf>, %4, %cst [0] : vector<4x256xf32> to vector<256xf32>
    %6 = vector.shape_cast %5 : vector<256xf32> to vector<1x256xf32>
    %7 = vector.broadcast %6 : vector<1x256xf32> to vector<4x256xf32>
    %8 = arith.subf %4, %7 : vector<4x256xf32>
    %9 = math.exp %8 : vector<4x256xf32>
    %cst_3 = arith.constant dense<0.000000e+00> : vector<256xf32>
    %10 = vector.multi_reduction <add>, %9, %cst_3 [0] : vector<4x256xf32> to vector<256xf32>
    %11 = vector.shape_cast %10 : vector<256xf32> to vector<1x256xf32>
    %12 = vector.broadcast %11 : vector<1x256xf32> to vector<4x256xf32>
    %13 = arith.divf %9, %12 : vector<4x256xf32>
    %14 = math.exp %13 : vector<4x256xf32>
    %cst_4 = arith.constant dense<0.000000e+00> : vector<256xf32>
    %15 = vector.multi_reduction <add>, %14, %cst_4 [0] : vector<4x256xf32> to vector<256xf32>
    %16 = vector.shape_cast %15 : vector<256xf32> to vector<1x256xf32>
    %17 = math.log %16 : vector<1x256xf32>
    %18 = vector.broadcast %17 : vector<1x256xf32> to vector<4x256xf32>
    %19 = arith.subf %13, %18 : vector<4x256xf32>
    %c0_5 = arith.constant 0 : index
    %c0_6 = arith.constant 0 : index
    %c0_7 = arith.constant 0 : index
    %20 = vector.load %arg4[%c0_5, %c0_6, %c0_7] : memref<1x1x256xi32, #tpu.memory_space<vmem>>, vector<1x1x256xi32>
    %21 = vector.shape_cast %20 : vector<1x1x256xi32> to vector<1x256xi32>
    %22 = tpu.iota {dimensions = array<i32: 0>} : vector<4x256xi32>
    %23 = vector.broadcast %21 : vector<1x256xi32> to vector<4x256xi32>
    %24 = arith.cmpi eq, %22, %23 : vector<4x256xi32>
    %c0_8 = arith.constant 0 : index
    %c0_9 = arith.constant 0 : index
    %25 = vector.load %arg2[%c0_8, %c0_9] : memref<4x1xf32, #tpu.memory_space<vmem>>, vector<4x1xf32>
    %26 = vector.broadcast %25 : vector<4x1xf32> to vector<4x256xf32>
    %27 = arith.mulf %26, %19 : vector<4x256xf32>
    %cst_10 = arith.constant 0.000000e+00 : f32
    %28 = vector.broadcast %cst_10 : f32 to vector<4x256xf32>
    %29 = arith.select %24, %27, %28 : vector<4x256xi1>, vector<4x256xf32>
    %cst_11 = arith.constant dense<0.000000e+00> : vector<256xf32>
    %30 = vector.multi_reduction <add>, %29, %cst_11 [0] : vector<4x256xf32> to vector<256xf32>
    %31 = vector.shape_cast %30 : vector<256xf32> to vector<1x256xf32>
    %cst_12 = arith.constant 0.000000e+00 : f32
    %32 = vector.broadcast %cst_12 : f32 to vector<1x256xf32>
    %33 = arith.subf %32, %31 : vector<1x256xf32>
    %c0_13 = arith.constant 0 : index
    %c0_14 = arith.constant 0 : index
    %c0_15 = arith.constant 0 : index
    %34 = vector.load %arg5[%c0_13, %c0_14, %c0_15] : memref<1x1x256xf32, #tpu.memory_space<vmem>>, vector<1x1x256xf32>
    %35 = vector.shape_cast %34 : vector<1x1x256xf32> to vector<1x256xf32>
    %c0_16 = arith.constant 0 : index
    %c0_17 = arith.constant 0 : index
    %c0_18 = arith.constant 0 : index
    %36 = vector.load %arg6[%c0_16, %c0_17, %c0_18] : memref<1x1x256xf32, #tpu.memory_space<vmem>>, vector<1x1x256xf32>
    %37 = vector.shape_cast %36 : vector<1x1x256xf32> to vector<1x256xf32>
    %38 = arith.mulf %33, %35 : vector<1x256xf32>
    %39 = arith.addf %37, %38 : vector<1x256xf32>
    %c0_19 = arith.constant 0 : index
    %c0_20 = arith.constant 0 : index
    %c0_21 = arith.constant 0 : index
    %40 = vector.load %arg6[%c0_19, %c0_20, %c0_21] : memref<1x1x256xf32, #tpu.memory_space<vmem>>, vector<1x1x256xf32>
    %41 = vector.shape_cast %40 : vector<1x1x256xf32> to vector<1x256xf32>
    %42 = vector.shape_cast %39 : vector<1x256xf32> to vector<1x1x256xf32>
    tpu.vector_store %arg6[%c0_19, %c0_20, %c0_21], %42 {strides = array<i32>} : memref<1x1x256xf32, #tpu.memory_space<vmem>>, vector<1x1x256xf32>,
    %c0_22 = arith.constant 0 : index
    %c0_23 = arith.constant 0 : index
    %c0_24 = arith.constant 0 : index
    %43 = vector.load %arg7[%c0_22, %c0_23, %c0_24] : memref<1x1x256xf32, #tpu.memory_space<vmem>>, vector<1x1x256xf32>
    %44 = vector.shape_cast %43 : vector<1x1x256xf32> to vector<1x256xf32>
    %45 = arith.addf %44, %35 : vector<1x256xf32>
    %c0_25 = arith.constant 0 : index
    %c0_26 = arith.constant 0 : index
    %c0_27 = arith.constant 0 : index
    %46 = vector.load %arg7[%c0_25, %c0_26, %c0_27] : memref<1x1x256xf32, #tpu.memory_space<vmem>>, vector<1x1x256xf32>
    %47 = vector.shape_cast %46 : vector<1x1x256xf32> to vector<1x256xf32>
    %48 = vector.shape_cast %45 : vector<1x256xf32> to vector<1x1x256xf32>
    tpu.vector_store %arg7[%c0_25, %c0_26, %c0_27], %48 {strides = array<i32>} : memref<1x1x256xf32, #tpu.memory_space<vmem>>, vector<1x1x256xf32>,
    return
  }
  func.func @transform_0(%arg0: i32, %arg1: i32) -> (i32, i32) {
    %c0_i32 = arith.constant 0 : i32
    %c0_i32_0 = arith.constant 0 : i32
    %c0_i32_1 = arith.constant 0 : i32
    return %c0_i32, %c0_i32_0 : i32, i32
  }
  func.func @transform_1(%arg0: i32, %arg1: i32) -> (i32, i32, i32) {
    %c0_i32 = arith.constant 0 : i32
    %c0_i32_0 = arith.constant 0 : i32
    return %arg0, %c0_i32, %arg1 : i32, i32, i32
  }
  func.func @transform_2(%arg0: i32, %arg1: i32) -> (i32, i32, i32) {
    %c0_i32 = arith.constant 0 : i32
    %c0_i32_0 = arith.constant 0 : i32
    return %arg0, %c0_i32, %arg1 : i32, i32, i32
  }
  func.func @transform_3(%arg0: i32, %arg1: i32) -> (i32, i32, i32) {
    %c0_i32 = arith.constant 0 : i32
    %c0_i32_0 = arith.constant 0 : i32
    return %arg0, %c0_i32, %arg1 : i32, i32, i32
  }
  func.func @transform_4(%arg0: i32, %arg1: i32) -> (i32, i32, i32) {
    %c0_i32 = arith.constant 0 : i32
    %c0_i32_0 = arith.constant 0 : i32
    %c0_i32_1 = arith.constant 0 : i32
    return %arg0, %c0_i32, %c0_i32_0 : i32, i32, i32
  }
  func.func @transform_5(%arg0: i32, %arg1: i32) -> (i32, i32, i32) {
    %c0_i32 = arith.constant 0 : i32
    %c0_i32_0 = arith.constant 0 : i32
    %c0_i32_1 = arith.constant 0 : i32
    return %arg0, %c0_i32, %c0_i32_0 : i32, i32, i32
  }
}

</mosaic_0001>

<bundles_post_ra>
// kernel: tpu_custom_call.1
= control target key start
LH: loop header
LB: loop body
LE: loop exit
PB: predicated region body
PF: predicated region fallthrough
CT: control target
= control target key end

     0   :  { %11 = vsyncpa [#allocation3], 0  ;;  %s1239_s0 = inlined_call_operand.vmem [shape: f32[4,1], index: 0, kind: input, shape index: {}]   ;;  %s1240_s1 = inlined_call_operand.hbm [shape: f32[2,4,256], index: 1, kind: input, shape index: {}]   ;;  %s1241_s2 = inlined_call_operand.vmem [shape: s32[2,1,256], index: 2, kind: input, shape index: {}]   ;;  %s1242_s3 = inlined_call_operand.vmem [shape: f32[2,1,256], index: 3, kind: input, shape index: {}]   ;;  %s1243_s4 = inlined_call_operand.hbm [shape: f32[2,1,256], index: 4, kind: output, shape index: {0}]   ;;  %s1244_s5 = inlined_call_operand.hbm [shape: f32[2,1,256], index: 5, kind: output, shape index: {1}]  }
   0x1   :  { %13 = vsyncpa [#allocation3 + $0x1], 0 }
   0x2   :  { %14 = vsyncpa [#allocation4], 0 }
   0x3   :  { %16 = vsyncpa [#allocation4 + $0x1], 0 }
   0x4   :  { %17 = vsyncpa [#allocation7], 0 }
   0x5   :  { %19 = vsyncpa [#allocation7 + $0x1], 0  ;;  %s971_s18 = smov 0   ;;  %s973_s19 = smov 0  }
   0x6   :  { %s975_s20 = smov 0   ;;  %s977_s21 = smov 0  }
   0x7   :  { %s979_s22 = smov 0   ;;  %s981_s23 = smov 0  }
   0x8 LB: > { %s683_s24 = sadd.s32 4294967295, %s933_s23   ;;  %s684_s25 = sadd.s32 4294967294, %s933_s23   ;;  %s933_s23 = sphi %s981_s23, %s25_s23   ;;  %s929_s22 = sphi %s979_s22, %s1262_s22   ;;  %s925_s21 = sphi %s977_s21, %s1261_s21   ;;  %s921_s20 = sphi %s975_s20, %s1260_s20   ;;  %s917_s19 = sphi %s973_s19, %s1259_s19   ;;  %s913_s18 = sphi %s971_s18, %s1258_s18  }
   0x9   : > { %s37_s26 = sadd.s32 1, %s929_s22  ;;  %s67_s27 = sadd.s32 1, %s921_s20 }
   0xa   : > { %p39_p0 = scmp.ge.s32.totalorder %s37_s26, 2  ;;  %p74_p1 = scmp.ne.s32.totalorder %s921_s20, %s917_s19 }
   0xb   : > { %p75_p2 = scmp.eq.s32.totalorder %s933_s23, 0  ;;  %p80_p3 = scmp.ne.s32.totalorder %s917_s19, %s913_s18 }
   0xc   : > { %s1264_s26 = smov (%p39_p0, %s37_s26), 0  ;;  %p81_p5 = scmp.eq.s32.totalorder %s683_s24, 0 }
   0xd   : > { %p1012_p4 = por %p75_p2, %p74_p1  ;;  %s62_s29 = ssub.s32 %s929_s22, %s1264_s26 }
   0xe   : > { %p160_p6 = scmp.eq.s32.totalorder %s683_s24, 1  ;;  %p65_p7 = scmp.eq.s32.totalorder %s62_s29, 0 }
   0xf   : > { %p1018_p8 = por %p81_p5, %p80_p3  ;;  %p166_p10 = scmp.eq.s32.totalorder %s684_s25, 1 }
  0x10   : > { %p1022_p9 = por %p160_p6, %p74_p1  ;;  %p724_p13 = scmp.lt.s32.totalorder %s933_s23, 2 }
  0x11   : > { %s1027_s7 = scalar_select %p65_p7, %s921_s20, %s67_s27  }
  0x12   : > { %s1248_s6 = scalar_select %p1022_p9, 1, 0 }
  0x13   : > { %p1029_p11 = por %p166_p10, %p80_p3  ;;  %s215_s9 = sand.u32 1, %s921_s20  }
  0x14   : > { %s687_s10 = sshll.u32 %s215_s9, 3  ;;  %s704_s11 = sshll.u32 %s929_s22, 7 }
  0x15   : > { %s1249_s8 = scalar_select %p1029_p11, 1, 0 }
  0x16   : > { %s1040_s14 = scalar_lea.hbm %s1240_s1, %s704_s11  ;;  %s219_s15 = scalar_lea.vmem [#allocation2], %s687_s10 }
  0x17   : > { %s229_s16 = sshll.u32 %s219_s15, 4  ;;  %p1046_p0 = pnand %p724_p13, %p1012_p4  ;;  %s1042_s16 = int_to_ptr.vmem [resolvable:$true] %s229_s16 }
  0x18   : > { %s216_s24 = scalar_lea.sflag [#allocation3], %s215_s9  ;;  %s789_s25 = scalar_lea.hbm %s1040_s14, 128 }
  0x19   : > { %p790_p3 = scmp.ne.s32.totalorder %s1040_s14, %s789_s25  ;;  %p791_p5 = pneg %p1046_p0 }
  0x1a   : > { %s794_s28 = scalar_lea.hbm %s1240_s1, 256  ;;  %p795_p4 = scmp.lt.u32.totalorder %s1040_s14, %s1240_s1 }
  0x1b   : > { %p792_p6 = pnand %p791_p5, %p790_p3  ;;  %p796_p10 = scmp.lt.u32.totalorder %s794_s28, %s789_s25 }
  0x1c   : > { %p798_p12 = scmp.lt.u32.totalorder %s789_s25, %s1040_s14 }
  0x1d   : > { %p793_p7 = pneg %p792_p6  ;;  %p797_p13 = por %p796_p10, %p795_p4 }
  0x1f   : > { %p799_p1 = por %p798_p12, %p797_p13 }
  0x21   : > { %p800_p2 = pnand %p799_p1, %p793_p7 }
  0x23   : > { %803 = shalt.err (!%p800_p2)
}
  0x24   : > { %s804_s9 = scalar_lea.vmem %s1042_s16, 128  ;;  %s935_s12 = smov [#allocation2]  }
  0x25   : > { %p805_p3 = scmp.ne.s32.totalorder %s1042_s16, %s804_s9  ;;  %s809_s13 = sshll.u32 %s935_s12, 4  ;;  %s810_s13 = int_to_ptr.vmem [resolvable:$false] %s809_s13 }
  0x26   : > { %s811_s15 = scalar_lea.vmem %s810_s13, 256  ;;  %p812_p9 = scmp.lt.s32.totalorder %s1042_s16, %s810_s13 }
  0x27   : > { %p807_p6 = pnand %p805_p3, %p791_p5  ;;  %p813_p4 = scmp.lt.s32.totalorder %s811_s15, %s804_s9 }
  0x29   : > { %p808_p11 = pneg %p807_p6  ;;  %p814_p10 = por %p813_p4, %p812_p9 }
  0x2b   : > { %p815_p12 = pnand %p814_p10, %p808_p11 }
  0x2d   : > { %818 = shalt.err (!%p815_p12)
}
  0x2e   : > { %716 = dma.hbm_to_vmem [thread:$0]  (!%p1046_p0), %s1040_s14, 128, %s1042_s16, %s216_s24  }
  0x2f   : > { %p1251_p1 = scmp.lt.s32.totalorder %s933_s23, 3  ;;  %p1252_p2 = scmp.ge.s32.totalorder %s933_s23, 1 }
  0x31   : > { %p259_p5 = pnand %p1252_p2, %p1251_p1 }
  0x32   : > { %s1082_s25 = sand.u32 (!%p259_p5), 1, %s917_s19  }
  0x33   : > { %262 = sbr.rel (%p259_p5) target bundleno = 231 (0xe7), region = 36  ;;  %s691_s27 = sshll.u32 (!%p259_p5), %s1082_s25, 3 }
  0x34   : > { %s265_s29 = scalar_lea.sflag (!%p259_p5), [#allocation3], %s1082_s25  ;;  %s268_s28 = scalar_lea.vmem (!%p259_p5), [#allocation2], %s691_s27 }
  0x3a   : > { %900 = dma.done.wait (%p1018_p8), %s265_s29, 128  }
  0x3b   : > { %902 = vsyncadd (%p1018_p8), %s265_s29, 4294967168  ;;  %p318_p9 = scmp.lt.s32.totalorder %s925_s21, 1  ;;  %v339_v0 = vlaneseq  ;;  %v936_v1 = vmov 0   ;;  %vm349_vm0 = vcmask 1043456   ;;  %v435_v5 = vld [vmem:[%s1239_s0] sm:$0xf] }
  0x3c   : > { %777 = vset.pattern.permute.xlu0 %v936_v1  ;;  %v345_v7 = vld [vmem:[%s268_s28] sm:$0xff]  ;;  %s692_s15 = sshll.u32 %s1082_s25, 1  ;;  %v937_v31 = vmov 0.0   ;;  %s705_s28 = sshll.u32 %s925_s21, 5 }
  0x3d   : > { %s319_s14 = scalar_select %p318_p9, %s925_s21, 1  ;;  %v1092_v2 = vshrl.u32 %v339_v0, 7  ;;  %438 = vperm.xlu0 %777, %v435_v5   ;;  %v347_v10 = vcombine.high %v345_v7, %v345_v7  ;;  %v350_v11 = vsel %vm349_vm0, %v345_v7, -inf  ;;  %vm1120_vm3 = vcmp.lt.s32.totalorder %v339_v0, 256 }
  0x3e   : > { %v351_v13 = vrot.slane %v350_v11, 4  ;;  %s1124_s27 = scalar_lea.vmem [#allocation5], %s692_s15  ;;  %s315_s29 = scalar_lea.vmem [#allocation6], %s692_s15 }
  0x3f   : > { %s694_s16 = sshll.u32 %s319_s14, 1  ;;  %v427_v3 = vsub.s32 0, %v1092_v2  ;;  %v431_v4 = vsub.s32 1, %v1092_v2  ;;  %v357_v16 = vsel %vm349_vm0, %v347_v10, -inf  ;;  %343 = vst.msk [vmem:[%s1124_s27] sm:$0x3] %vm1120_vm3, %v937_v31  ;;  %s1139_s17 = scalar_lea.hbm %s1244_s5, %s705_s28 }
  0x40   : > { %s324_s10 = scalar_lea.vmem %s1241_s2, %s694_s16  ;;  %s333_s12 = scalar_lea.vmem %s1242_s3, %s694_s16  ;;  %v352_v17 = vmax.f32 %v350_v11, %v351_v13  ;;  %v358_v18 = vrot.slane %v357_v16, 4  ;;  %344 = vst.msk [vmem:[%s315_s29] sm:$0x3] %vm1120_vm3, %v937_v31 }
  0x41   : > { %v464_v6 = vld [vmem:[%s333_s12] sm:$0x3]  ;;  %s540_s24 = sshll.u32 %s315_s29, 4  ;;  %p1255_p11 = scmp.ne.s32.totalorder %s1248_s6, 0  ;;  %s1141_s24 = int_to_ptr.vmem [resolvable:$true] %s540_s24 }
  0x42   : > { %v1105_v8 = vrot.slane %v464_v6, %v427_v3  ;;  %v1107_v9 = vrot.slane %v464_v6, %v431_v4  ;;  %v422_v12 = vld [vmem:[%s324_s10] sm:$0x3]  ;;  %v353_v19 = vrot.slane %v352_v17, 2  ;;  %v359_v20 = vmax.f32 %v357_v16, %v358_v18  ;;  %s512_s10 = scalar_lea.sflag [#allocation7], %s1082_s25  ;;  %s819_s11 = scalar_lea.vmem %s1141_s24, 32 }
  0x43   : > { %v1110_v14 = vrot.slane %v422_v12, %v427_v3  ;;  %v1112_v15 = vrot.slane %v422_v12, %v431_v4  ;;  %p820_p8 = scmp.ne.s32.totalorder %s1141_s24, %s819_s11  ;;  %s938_s9 = smov [#allocation6]  }
  0x44   : > { %v354_v21 = vmax.f32 %v352_v17, %v353_v19  ;;  %v360_v22 = vrot.slane %v359_v20, 2  ;;  %s823_s12 = sshll.u32 %s938_s9, 4  ;;  %s824_s12 = int_to_ptr.vmem [resolvable:$false] %s823_s12 }
  0x45   : > { %vm433_vm1 = vcmp.eq.s32.totalorder %v1092_v2, %v1110_v14  ;;  %vm434_vm2 = vcmp.eq.s32.totalorder %v1092_v2, %v1112_v15  ;;  %p821_p0 = pnand %p820_p8, %p1255_p11  ;;  %s825_s30 = scalar_lea.vmem %s824_s12, 64 }
  0x46   : > { %v355_v23 = vrot.slane %v354_v21, 1  ;;  %v361_v24 = vmax.f32 %v359_v20, %v360_v22  ;;  %p826_p13 = scmp.lt.s32.totalorder %s1141_s24, %s824_s12  ;;  %p827_p3 = scmp.lt.s32.totalorder %s825_s30, %s819_s11 }
  0x47   : > { %v503_v33 = vld [vmem:[%s315_s29] sm:$0x3]  ;;  %p822_p7 = pneg %p821_p0 }
  0x48   : > { %v356_v25 = vmax.f32 %v354_v21, %v355_v23  ;;  %v362_v26 = vrot.slane %v361_v24, 1  ;;  %v504_v34 = vadd.f32 %v503_v33, %v464_v6  ;;  %p828_p6 = por %p827_p3, %p826_p13 }
  0x4a   : > { %v363_v27 = vmax.f32 %v361_v24, %v362_v26  ;;  %505 = vst.msk [vmem:[%s315_s29] sm:$0x3] %vm1120_vm3, %v504_v34  ;;  %p829_p4 = pnand %p828_p6, %p822_p7 }
  0x4c   : > { %v366_v28 = vcombine.low %v356_v25, %v363_v27 }
  0x4e   : > { %v368_v29 = vsub.f32 %v345_v7, %v366_v28 }
  0x50   : > { %v369_v32 = vmul.f32 1.442695, %v368_v29 }
  0x52   : > { %779 = vpow2.f32 %v369_v32 }
  0x5c   : > { %v780_v35 = vpop.eup %779 }
  0x5d   : > { %v372_v36 = vcombine.high %v780_v35, %v780_v35  ;;  %v374_v37 = vsel %vm349_vm0, %v780_v35, 0.0 }
  0x5e   : > { %832 = shalt.err (!%p829_p4)
}
  0x5f   : > { %s833_s13 = scalar_lea.hbm %s1139_s17, 32  ;;  %s837_s14 = scalar_lea.hbm %s1244_s5, 64 }
  0x60   : > { %p834_p10 = scmp.ne.s32.totalorder %s1139_s17, %s833_s13  ;;  %p838_p2 = scmp.lt.u32.totalorder %s1139_s17, %s1244_s5 }
  0x61   : > { %p839_p5 = scmp.lt.u32.totalorder %s837_s14, %s833_s13  ;;  %p841_p8 = scmp.lt.u32.totalorder %s833_s13, %s1139_s17 }
  0x62   : > { %p835_p12 = pnand %p834_p10, %p1255_p11 }
  0x63   : > { %p840_p9 = por %p839_p5, %p838_p2 }
  0x64   : > { %p836_p1 = pneg %p835_p12 }
  0x65   : > { %p842_p0 = por %p841_p8, %p840_p9 }
  0x67   : > { %p843_p7 = pnand %p842_p0, %p836_p1 }
  0x69   : > { %846 = shalt.err (!%p843_p7)
}
  0x6a   : > { %710 = dma.vmem_to_hbm [thread:$0]  (%p1255_p11), %s1141_s24, 32, %s1139_s17, %s512_s10   ;;  %v375_v38 = vrot.slane %v374_v37, 4  ;;  %v381_v39 = vsel %vm349_vm0, %v372_v36, 0.0  ;;  %v939_v33 = vmov 1966171168  }
  0x6b   : > { %v382_v41 = vrot.slane %v381_v39, 4  ;;  %v483_v34 = vunpack.c.l.s4 %v939_v33  ;;  %s526_s17 = sshll.u32 %s1124_s27, 4  ;;  %s1187_s11 = scalar_lea.hbm %s1243_s4, %s705_s28  ;;  %s1189_s17 = int_to_ptr.vmem [resolvable:$true] %s526_s17 }
  0x6c   : > { %v376_v40 = vadd.f32 %v375_v38, %v374_v37  ;;  %s507_s12 = scalar_lea.sflag [#allocation4], %s1082_s25  ;;  %s847_s30 = scalar_lea.vmem %s1189_s17, 32 }
  0x6d   : > { %v383_v43 = vadd.f32 %v382_v41, %v381_v39  ;;  %v484_v37 = vunpack.c.0.s8 %v483_v34  ;;  %p848_p13 = scmp.ne.s32.totalorder %s1189_s17, %s847_s30  ;;  %s940_s21 = smov [#allocation5]  }
  0x6e   : > { %v377_v42 = vrot.slane %v376_v40, 2  ;;  %s851_s13 = sshll.u32 %s940_s21, 4  ;;  %s852_s13 = int_to_ptr.vmem [resolvable:$false] %s851_s13 }
  0x6f   : > { %v384_v45 = vrot.slane %v383_v43, 2  ;;  %p849_p3 = pnand %p848_p13, %p1255_p11  ;;  %s853_s15 = scalar_lea.vmem %s852_s13, 64 }
  0x70   : > { %v378_v44 = vadd.f32 %v377_v42, %v376_v40  ;;  %v487_v42 = vsub.s32 %v484_v37, %v1092_v2  ;;  %p854_p4 = scmp.lt.s32.totalorder %s1189_s17, %s852_s13  ;;  %p855_p10 = scmp.lt.s32.totalorder %s853_s15, %s847_s30 }
  0x71   : > { %v385_v47 = vadd.f32 %v384_v45, %v383_v43  ;;  %p850_p6 = pneg %p849_p3 }
  0x72   : > { %v379_v46 = vrot.slane %v378_v44, 1  ;;  %p856_p12 = por %p855_p10, %p854_p4 }
  0x73   : > { %v386_v49 = vrot.slane %v385_v47, 1 }
  0x74   : > { %v380_v48 = vadd.f32 %v379_v46, %v378_v44  ;;  %p857_p1 = pnand %p856_p12, %p850_p6 }
  0x75   : > { %v387_v50 = vadd.f32 %v386_v49, %v385_v47  ;;  %v465_v47 = vld [vmem:[%s1124_s27] sm:$0x3] }
  0x77   : > { %v390_v51 = vcombine.low %v380_v48, %v387_v50 }
  0x79   : > { %781 = vrcp.f32 %v390_v51 }
  0x83   : > { %v782_v52 = vpop.eup %781 }
  0x84   : > { %v393_v53 = vmul.f32 %v782_v52, %v780_v35 }
  0x86   : > { %v394_v54 = vmul.f32 1.442695, %v393_v53 }
  0x88   : > { %783 = vpow2.f32 %v394_v54 }
  0x92   : > { %v784_v55 = vpop.eup %783 }
  0x93   : > { %v397_v56 = vcombine.high %v784_v55, %v784_v55  ;;  %v399_v57 = vsel %vm349_vm0, %v784_v55, 0.0 }
  0x94   : > { %v400_v58 = vrot.slane %v399_v57, 4 }
  0x95   : > { %v406_v59 = vsel %vm349_vm0, %v397_v56, 0.0 }
  0x96   : > { %v401_v60 = vadd.f32 %v400_v58, %v399_v57  ;;  %v407_v61 = vrot.slane %v406_v59, 4 }
  0x98   : > { %v408_v62 = vadd.f32 %v407_v61, %v406_v59  ;;  %v402_v63 = vrot.slane %v401_v60, 2 }
  0x9a   : > { %v409_v0 = vrot.slane %v408_v62, 2  ;;  %v403_v1 = vadd.f32 %v402_v63, %v401_v60 }
  0x9c   : > { %v410_v3 = vadd.f32 %v409_v0, %v408_v62  ;;  %v404_v4 = vrot.slane %v403_v1, 1 }
  0x9e   : > { %v411_v5 = vrot.slane %v410_v3, 1  ;;  %v405_v6 = vadd.f32 %v404_v4, %v403_v1 }
  0xa0   : > { %v412_v7 = vadd.f32 %v411_v5, %v410_v3  ;;  %785 = vlog2.f32 %v405_v6 }
  0xa2   : > { %787 = vlog2.f32 %v412_v7 }
  0xaa   : > { %v786_v10 = vpop.eup %785 }
  0xab   : > { %v414_v12 = vmul.f32 0.6931472, %v786_v10 }
  0xac   : > { %v788_v11 = vpop.eup %787 }
  0xad   : > { %v416_v13 = vmul.f32 0.6931472, %v788_v11 }
  0xaf   : > { %v419_v16 = vcombine.low %v414_v12, %v416_v13 }
  0xb1   : > { %v421_v17 = vsub.f32 %v393_v53, %v419_v16 }
  0xb3   : > { %v442_v18 = vcombine.high %v421_v17, %v421_v17 }
  0xbc   : > { %v439_v19 = vpop.permute.xlu0 %438 }
  0xbd   : > { %v444_v20 = vmul.f32 %v439_v19, %v421_v17  ;;  %v445_v21 = vmul.f32 %v442_v18, %v439_v19 }
  0xbf   : > { %v446_v22 = vsel %vm433_vm1, %v444_v20, 0.0  ;;  %v447_v23 = vsel %vm434_vm2, %v445_v21, 0.0 }
  0xc0   : > { %v448_v24 = vsel %vm349_vm0, %v446_v22, 0.0  ;;  %v455_v25 = vsel %vm349_vm0, %v447_v23, 0.0 }
  0xc1   : > { %v449_v26 = vrot.slane %v448_v24, 4  ;;  %v456_v27 = vrot.slane %v455_v25, 4 }
  0xc3   : > { %v450_v28 = vadd.f32 %v449_v26, %v448_v24  ;;  %v457_v29 = vadd.f32 %v456_v27, %v455_v25 }
  0xc5   : > { %v451_v31 = vrot.slane %v450_v28, 2  ;;  %v458_v32 = vrot.slane %v457_v29, 2 }
  0xc7   : > { %v452_v14 = vadd.f32 %v451_v31, %v450_v28  ;;  %v459_v35 = vadd.f32 %v458_v32, %v457_v29 }
  0xc9   : > { %v453_v36 = vrot.slane %v452_v14, 1  ;;  %v460_v15 = vrot.slane %v459_v35, 1 }
  0xcb   : > { %v454_v38 = vadd.f32 %v453_v36, %v452_v14  ;;  %v461_v39 = vadd.f32 %v460_v15, %v459_v35 }
  0xcd   : > { %v462_v40 = vsub.f32 0.0, %v454_v38  ;;  %v463_v41 = vsub.f32 0.0, %v461_v39 }
  0xcf   : > { %v477_v43 = vmul.f32 %v1105_v8, %v462_v40  ;;  %v478_v44 = vmul.f32 %v1107_v9, %v463_v41 }
  0xd1   : > { %v481_v45 = vcombine.low %v477_v43, %v478_v44 }
  0xd3   : > { %v488_v46 = vrot.slane %v481_v45, %v487_v42 }
  0xd5   : > { %v495_v48 = vrot.slane %v488_v46, %v487_v42 }
  0xd7   : > { %v497_v49 = vadd.f32 %v495_v48, %v465_v47 }
  0xd9   : > { %502 = vst.msk [vmem:[%s1124_s27] sm:$0x3] %vm1120_vm3, %v497_v49 }
  0xda   : > { %860 = shalt.err (!%p857_p1)
}
  0xdb   : > { %s861_s25 = scalar_lea.hbm %s1187_s11, 32  ;;  %s865_s29 = scalar_lea.hbm %s1243_s4, 64 }
  0xdc   : > { %p862_p2 = scmp.ne.s32.totalorder %s1187_s11, %s861_s25  ;;  %p866_p8 = scmp.lt.u32.totalorder %s1187_s11, %s1243_s4 }
  0xdd   : > { %p867_p0 = scmp.lt.u32.totalorder %s865_s29, %s861_s25  ;;  %p869_p13 = scmp.lt.u32.totalorder %s861_s25, %s1187_s11 }
  0xde   : > { %p863_p5 = pnand %p862_p2, %p1255_p11 }
  0xdf   : > { %p868_p7 = por %p867_p0, %p866_p8 }
  0xe0   : > { %p864_p9 = pneg %p863_p5 }
  0xe1   : > { %p870_p3 = por %p869_p13, %p868_p7 }
  0xe3   : > { %p871_p6 = pnand %p870_p3, %p864_p9 }
  0xe5   : > { %874 = shalt.err (!%p871_p6)
}
  0xe6   : > { %709 = dma.vmem_to_hbm [thread:$0]  (%p1255_p11), %s1189_s17, 32, %s1187_s11, %s507_s12  }
  0xe7 PF: > { %s552_s9 = sand.u32 1, %s913_s18   ;;  %p1256_p4 = scmp.ne.s32.totalorder %s1249_s8, 0 }
  0xe8   : > { %p1257_p10 = scmp.ge.s32.totalorder %s933_s23, 2  ;;  %s553_s24 = scalar_lea.sflag [#allocation4], %s552_s9 }
  0xea   : > { %p718_p12 = pnand %p1257_p10, %p1256_p4 }
  0xec   : > { %904 = dma.done.wait (!%p718_p12), %s553_s24, 32  }
  0xed   : > { %906 = vsyncadd (!%p718_p12), %s553_s24, 4294967264  ;;  %s562_s10 = scalar_lea.sflag [#allocation7], %s552_s9 }
  0xee   : > { %908 = dma.done.wait (!%p718_p12), %s562_s10, 32  }
  0xef   : > { %910 = vsyncadd (!%p718_p12), %s562_s10, 4294967264  ;;  %s25_s23 = sadd.s32 1, %s933_s23   ;;  %s1258_s18 = smov %s917_s19 }
  0xf0   : > { %p22_p1 = scmp.ge.s32.totalorder %s25_s23, 4   ;;  %s1259_s19 = smov %s921_s20 }
  0xf1   : > { %s1260_s20 = smov %s1027_s7  ;;  %s1261_s21 = smov %s929_s22 }
  0xf2   : > { %s1262_s22 = smov %s1264_s26  ;;  %24 = sbr.rel (!%p22_p1) target bundleno = 8 (0x8), region = 108 }
  0xf9   :  { %567 = vsyncpa [#allocation3], 1 }
  0xfa   :  { %569 = vsyncpa [#allocation3 + $0x1], 1 }
  0xfb   :  { %570 = vsyncpa [#allocation4], 1 }
  0xfc   :  { %572 = vsyncpa [#allocation4 + $0x1], 1 }
  0xfd   :  { %573 = vsyncpa [#allocation7], 1 }
  0xfe   :  { %575 = vsyncpa [#allocation7 + $0x1], 1 }

</bundles_post_ra>
